<compile_context>
chip_gen: v6e
topology: v6e:2x2x1
jax: 0.10.0
libtpu: 0.0.40
codegen_flags: <defaults>
</compile_context>

<pallas_src>
import functools

import jax
import jax.numpy as jnp
from jax.experimental import pallas as pl
from jax.experimental.pallas import tpu as pltpu


def _adapter_kernel(x_ref, w1_ref, b1_ref, w2_ref, b2_ref, o_ref):
    # x_ref:  (TM, D)   row tile of the flattened input
    # w1_ref: (D, Bn)   first linear weight, stored (in, out)
    # b1_ref: (1, Bn)   first linear bias
    # w2_ref: (Bn, D)   second linear weight, stored (in, out)
    # b2_ref: (1, D)    second linear bias
    x = x_ref[...]

    # Linear1 -> bias -> ReLU  (native-dtype operands, f32 accumulation)
    h = jnp.dot(x, w1_ref[...], preferred_element_type=jnp.float32)
    h = jnp.maximum(h + b1_ref[...].astype(jnp.float32), 0.0)

    # Linear2 -> bias -> residual add (epilogue in f32, cast once at the end)
    y = jnp.dot(h.astype(x.dtype), w2_ref[...], preferred_element_type=jnp.float32)
    y = y + b2_ref[...].astype(jnp.float32)
    o_ref[...] = (x.astype(jnp.float32) + y).astype(o_ref.dtype)


def _choose_tile_m(m, d, bn, itemsize):
    """Largest row tile that amortizes grid-step overhead yet fits VMEM."""
    pack = max(8, 32 // itemsize)          # sublane packing: f32->8, bf16->16, int8->32
    max_tile = 512 if itemsize >= 4 else 1024
    if m <= max_tile:
        return m                           # single full-extent block (always layout-legal)
    budget = 48 << 20                      # keep well under v7x's 64 MiB physical VMEM
    # conservative: budget weights as if double-buffered
    weight_bytes = 2 * (2 * d * bn + bn + d) * itemsize
    tile = max_tile
    while tile > pack:
        io_bytes = 2 * 2 * tile * d * itemsize      # double-buffered x tile + out tile
        f32_live = 4 * tile * (bn + d)              # f32 h / y intermediates
        if (weight_bytes + io_bytes + f32_live <= budget
                and 4 * tile * bn <= (2 << 20)):    # keep h spill traffic bounded
            break
        tile //= 2
    return max(tile, pack)


def _vmem_limit_bytes(tile_m, d, bn, itemsize):
    weight_bytes = 2 * (2 * d * bn + bn + d) * itemsize   # worst case: double-buffered
    io_bytes = 2 * 2 * tile_m * d * itemsize
    f32_live = 4 * tile_m * (bn + d)
    needed = weight_bytes + io_bytes + f32_live
    return int(min(max(2 * needed, 32 << 20), 120 << 20))


@functools.partial(jax.jit, static_argnames=("tile_m",))
def adapter_forward(x, w1, b1, w2, b2, *, tile_m=None):
    """x: (..., input_dim). Returns x + Linear2(ReLU(Linear1(x)))."""
    orig_shape = x.shape
    d = orig_shape[-1]
    bn = w1.shape[1]
    x2d = x.reshape(-1, d)
    m = x2d.shape[0]
    itemsize = jnp.dtype(x.dtype).itemsize

    pack = max(8, 32 // itemsize)
    if tile_m is None:
        tile_m = _choose_tile_m(m, d, bn, itemsize)
    else:
        tile_m = min(int(tile_m), m)
        if tile_m < m:                       # partial blocks need sublane-aligned tiles
            tile_m = max(pack, (tile_m // pack) * pack)
    tile_m = int(tile_m)

    b1_2d = b1.reshape(1, bn)
    b2_2d = b2.reshape(1, d)

    grid = (pl.cdiv(m, tile_m),)             # no jnp.pad: Pallas masks the ragged tail

    # Weights/biases never change across the grid -> single VMEM buffer is enough.
    weight_mode = pl.Buffered(1)

    w_itemsize = jnp.dtype(w1.dtype).itemsize
    cost = pl.CostEstimate(
        flops=4 * m * d * bn,                                   # two matmuls
        transcendentals=0,
        bytes_accessed=2 * m * d * itemsize + (2 * d * bn + bn + d) * w_itemsize,
    )

    out2d = pl.pallas_call(
        _adapter_kernel,
        out_shape=jax.ShapeDtypeStruct((m, d), x.dtype),
        grid_spec=pltpu.PrefetchScalarGridSpec(
            num_scalar_prefetch=0,
            grid=grid,
            in_specs=[
                pl.BlockSpec((tile_m, d), lambda i: (i, 0)),                          # x tile
                pl.BlockSpec((d, bn), lambda i: (0, 0), pipeline_mode=weight_mode),   # W1
                pl.BlockSpec((1, bn), lambda i: (0, 0), pipeline_mode=weight_mode),   # b1
                pl.BlockSpec((bn, d), lambda i: (0, 0), pipeline_mode=weight_mode),   # W2
                pl.BlockSpec((1, d), lambda i: (0, 0), pipeline_mode=weight_mode),    # b2
            ],
            out_specs=pl.BlockSpec((tile_m, d), lambda i: (i, 0)),
        ),
        compiler_params=pltpu.CompilerParams(
            dimension_semantics=("parallel",),
            vmem_limit_bytes=_vmem_limit_bytes(tile_m, d, bn, itemsize),
        ),
        cost_estimate=cost,
    )(x2d, w1, b1_2d, w2, b2_2d)

    return out2d.reshape(orig_shape)


def init_adapter_params(key, input_dim, bottleneck_dim, dtype=jnp.float32):
    """Deterministic init matching nn.Linear's uniform(-1/sqrt(fan_in), ...)."""
    k1, k2, k3, k4 = jax.random.split(key, 4)
    lim1 = 1.0 / (input_dim ** 0.5)
    lim2 = 1.0 / (bottleneck_dim ** 0.5)
    # stored as (in, out) so the kernel computes x @ W
    w1 = jax.random.uniform(k1, (input_dim, bottleneck_dim), dtype,
                            minval=-lim1, maxval=lim1)
    b1 = jax.random.uniform(k2, (bottleneck_dim,), dtype,
                            minval=-lim1, maxval=lim1)
    w2 = jax.random.uniform(k3, (bottleneck_dim, input_dim), dtype,
                            minval=-lim2, maxval=lim2)
    b2 = jax.random.uniform(k4, (input_dim,), dtype,
                            minval=-lim2, maxval=lim2)
    return w1, b1, w2, b2


if __name__ == "__main__":
    key = jax.random.PRNGKey(0)
    k_x, k_p = jax.random.split(key)

    batch, seq, input_dim, bottleneck_dim = 2, 8, 32, 16
    x = jax.random.normal(k_x, (batch, seq, input_dim), jnp.float32)
    w1, b1, w2, b2 = init_adapter_params(k_p, input_dim, bottleneck_dim)

    out = adapter_forward(x, w1, b1, w2, b2)
    out = jax.block_until_ready(out)

    # pure-JAX reference
    h_ref = jnp.maximum(x @ w1 + b1, 0.0)
    ref = x + (h_ref @ w2 + b2)

    assert out.shape == x.shape
    assert jnp.allclose(out, ref, atol=1e-5, rtol=1e-5), "mismatch vs reference"
    print("KERNEL_OK")
</pallas_src>

<mosaic_0001>
module attributes {stable_mosaic.version = 11 : i64} {
  func.func @_adapter_kernel(%arg0: i32, %arg1: memref<16x32xf32, #tpu.memory_space<vmem>>, %arg2: memref<32x16xf32, #tpu.memory_space<vmem>>, %arg3: memref<1x16xf32, #tpu.memory_space<vmem>>, %arg4: memref<16x32xf32, #tpu.memory_space<vmem>>, %arg5: memref<1x32xf32, #tpu.memory_space<vmem>>, %arg6: memref<16x32xf32, #tpu.memory_space<vmem>>) attributes {dimension_semantics = [#tpu.dimension_semantics<parallel>], iteration_bounds = array<i64: 1>, scalar_prefetch = 0 : i64, scratch_operands = 0 : i64, tpu.core_type = #tpu.core_type<tc>, window_params = [{transform_indices = @transform_0, window_bounds = array<i64: 16, 32>}, {pipeline_mode = #tpu.pipeline_mode<synchronous>, transform_indices = @transform_1, window_bounds = array<i64: 32, 16>}, {pipeline_mode = #tpu.pipeline_mode<synchronous>, transform_indices = @transform_2, window_bounds = array<i64: 1, 16>}, {pipeline_mode = #tpu.pipeline_mode<synchronous>, transform_indices = @transform_3, window_bounds = array<i64: 16, 32>}, {pipeline_mode = #tpu.pipeline_mode<synchronous>, transform_indices = @transform_4, window_bounds = array<i64: 1, 32>}, {transform_indices = @transform_5, window_bounds = array<i64: 16, 32>}]} {
    %c0 = arith.constant 0 : index
    %c0_0 = arith.constant 0 : index
    %0 = vector.load %arg1[%c0, %c0_0] : memref<16x32xf32, #tpu.memory_space<vmem>>, vector<16x32xf32>
    %c0_1 = arith.constant 0 : index
    %c0_2 = arith.constant 0 : index
    %1 = vector.load %arg2[%c0_1, %c0_2] : memref<32x16xf32, #tpu.memory_space<vmem>>, vector<32x16xf32>
    %cst = arith.constant dense<0.000000e+00> : vector<16x16xf32>
    %2 = tpu.matmul %0, %1, %cst {dimension_numbers = #tpu.dot_dimension_numbers<[1], [0], [0], [1], [0, 0, 1, 1], [], []>} : vector<16x32xf32>, vector<32x16xf32>, vector<16x16xf32> -> vector<16x16xf32>
    %c0_3 = arith.constant 0 : index
    %c0_4 = arith.constant 0 : index
    %3 = vector.load %arg3[%c0_3, %c0_4] : memref<1x16xf32, #tpu.memory_space<vmem>>, vector<1x16xf32>
    %4 = vector.broadcast %3 : vector<1x16xf32> to vector<16x16xf32>
    %5 = arith.addf %2, %4 : vector<16x16xf32>
    %cst_5 = arith.constant 0.000000e+00 : f32
    %6 = vector.broadcast %cst_5 : f32 to vector<16x16xf32>
    %7 = arith.maximumf %5, %6 : vector<16x16xf32>
    %c0_6 = arith.constant 0 : index
    %c0_7 = arith.constant 0 : index
    %8 = vector.load %arg4[%c0_6, %c0_7] : memref<16x32xf32, #tpu.memory_space<vmem>>, vector<16x32xf32>
    %cst_8 = arith.constant dense<0.000000e+00> : vector<16x32xf32>
    %9 = tpu.matmul %7, %8, %cst_8 {dimension_numbers = #tpu.dot_dimension_numbers<[1], [0], [0], [1], [0, 0, 1, 1], [], []>} : vector<16x16xf32>, vector<16x32xf32>, vector<16x32xf32> -> vector<16x32xf32>
    %c0_9 = arith.constant 0 : index
    %c0_10 = arith.constant 0 : index
    %10 = vector.load %arg5[%c0_9, %c0_10] : memref<1x32xf32, #tpu.memory_space<vmem>>, vector<1x32xf32>
    %11 = vector.broadcast %10 : vector<1x32xf32> to vector<16x32xf32>
    %12 = arith.addf %9, %11 : vector<16x32xf32>
    %13 = arith.addf %0, %12 : vector<16x32xf32>
    %c0_11 = arith.constant 0 : index
    %c0_12 = arith.constant 0 : index
    %14 = vector.load %arg6[%c0_11, %c0_12] : memref<16x32xf32, #tpu.memory_space<vmem>>, vector<16x32xf32>
    tpu.vector_store %arg6[%c0_11, %c0_12], %13 {strides = array<i32>} : memref<16x32xf32, #tpu.memory_space<vmem>>, vector<16x32xf32>,
    return
  }
  func.func @transform_0(%arg0: i32) -> (i32, i32) {
    %c0_i32 = arith.constant 0 : i32
    %c0_i32_0 = arith.constant 0 : i32
    return %arg0, %c0_i32 : i32, i32
  }
  func.func @transform_1(%arg0: i32) -> (i32, i32) {
    %c0_i32 = arith.constant 0 : i32
    %c0_i32_0 = arith.constant 0 : i32
    %c0_i32_1 = arith.constant 0 : i32
    return %c0_i32, %c0_i32_0 : i32, i32
  }
  func.func @transform_2(%arg0: i32) -> (i32, i32) {
    %c0_i32 = arith.constant 0 : i32
    %c0_i32_0 = arith.constant 0 : i32
    %c0_i32_1 = arith.constant 0 : i32
    return %c0_i32, %c0_i32_0 : i32, i32
  }
  func.func @transform_3(%arg0: i32) -> (i32, i32) {
    %c0_i32 = arith.constant 0 : i32
    %c0_i32_0 = arith.constant 0 : i32
    %c0_i32_1 = arith.constant 0 : i32
    return %c0_i32, %c0_i32_0 : i32, i32
  }
  func.func @transform_4(%arg0: i32) -> (i32, i32) {
    %c0_i32 = arith.constant 0 : i32
    %c0_i32_0 = arith.constant 0 : i32
    %c0_i32_1 = arith.constant 0 : i32
    return %c0_i32, %c0_i32_0 : i32, i32
  }
  func.func @transform_5(%arg0: i32) -> (i32, i32) {
    %c0_i32 = arith.constant 0 : i32
    %c0_i32_0 = arith.constant 0 : i32
    return %arg0, %c0_i32 : i32, i32
  }
}

</mosaic_0001>

<bundles_post_ra>
// kernel: adapter_forward.1
= control target key start
LH: loop header
LB: loop body
LE: loop exit
PB: predicated region body
PF: predicated region fallthrough
CT: control target
= control target key end

     0   :  { %vm34_vm0 = vcmask 261120   ;;  %s358_s0 = inlined_call_operand.vmem [shape: f32[16,32], index: 0, kind: input, shape index: {}]   ;;  %s359_s1 = inlined_call_operand.vmem [shape: f32[32,16], index: 1, kind: input, shape index: {}]   ;;  %s360_s2 = inlined_call_operand.vmem [shape: f32[1,16], index: 2, kind: input, shape index: {}]   ;;  %s361_s3 = inlined_call_operand.vmem [shape: f32[16,32], index: 3, kind: input, shape index: {}]   ;;  %s362_s4 = inlined_call_operand.vmem [shape: f32[1,32], index: 4, kind: input, shape index: {}]   ;;  %s363_s5 = inlined_call_operand.hbm [shape: f32[16,32], index: 5, kind: output, shape index: {}]  }
   0x1   :  { %v26_v0 = vld [vmem:[%s359_s1 + $0x18] sm:$0xff]  ;;  %v25_v1 = vld [vmem:[%s359_s1 + $0x10] sm:$0xff]  ;;  %v21_v2 = vld [vmem:[%s358_s0] sm:$0xff] }
   0x2   :  { %245 = vmatprep.subr.mxu0 %v26_v0  ;;  %v24_v3 = vld [vmem:[%s359_s1 + $0x8] sm:$0xff]  ;;  %253 = vmatprep.mubr.msk.f32.mxu0 %vm34_vm0, %v21_v2 }
   0x3   :  { %246 = vmatpush3.msra.mxu0 %v26_v0 }
   0x4   :  { %10 = vsyncpa [#allocation3], 0  ;;  %247 = vmatprep.subr.mxu0 %v25_v1  ;;  %v23_v4 = vld [vmem:[%s359_s1] sm:$0xff]  ;;  %v22_v5 = vld [vmem:[%s358_s0 + $0x8] sm:$0xff]  ;;  %vm127_vm1 = vcmask 130048  }
   0x5   :  { %248 = vmatpush3.msra.mxu0 %v25_v1  ;;  %v119_v6 = vld [vmem:[%s361_s3 + $0x8] sm:$0xff]  ;;  %v118_v7 = vld [vmem:[%s361_s3] sm:$0xff]  ;;  %s288_s3 = smov [#allocation2]  }
   0x6   :  { %249 = vmatprep.subr.mxu0 %v24_v3  ;;  %256 = vmatprep.subr.mxu1 %v119_v6  ;;  %v229_v8 = vld [vmem:[%s360_s2] ss:$0 sm:$0xff]  ;;  %s218_s11 = sshll.u32 %s288_s3, 4  ;;  %s219_s11 = int_to_ptr.vmem [resolvable:$true] %s218_s11 }
   0x7   :  { %250 = vmatpush3.msra.mxu0 %v24_v3  ;;  %257 = vmatpush3.msra.mxu1 %v119_v6  ;;  %v232_v15 = vld [vmem:[%s362_s4] ss:$0 sm:$0xff]  ;;  %s266_s2 = scalar_lea.vmem %s219_s11, 256  ;;  %p271_p1 = scmp.lt.s32.totalorder %s219_s11, %s219_s11 }
   0x8   :  { %251 = vmatprep.subr.mxu0 %v23_v4  ;;  %258 = vmatprep.subr.mxu1 %v118_v7  ;;  %p267_p0 = scmp.ne.s32.totalorder %s219_s11, %s266_s2  ;;  %p272_p2 = scmp.lt.s32.totalorder %s266_s2, %s266_s2 }
   0x9   :  { %252 = vmatpush3.msra.mxu0 %v23_v4  ;;  %259 = vmatpush3.msra.mxu1 %v118_v7 }
   0xa   :  { %254 = vmatmul.mubr.msk.f32.vlgmr.msra.gmra.mxu0 %vm34_vm0, %v22_v5  ;;  %p273_p3 = por %p272_p2, %p271_p1 }
   0xc   :  { %p274_p4 = pnand %p273_p3, %p267_p0 }
  0xca   :  { %v255_v9 = vpop.f32.mrf.mxu0 }
  0xcb   :  { %v113_v10 = vadd.f32 %v255_v9, %v229_v8 }
  0xcc   :  { %v107_v11 = vpop.f32.mrf.mxu0 }
  0xcd   :  { %v108_v12 = vadd.f32 %v229_v8, %v107_v11  ;;  %v117_v14 = vmax.f32 %v113_v10, 0.0 }
  0xcf   :  { %v116_v13 = vmax.f32 %v108_v12, 0.0 }
  0xd1   :  { %260 = vmatprep.mubr.msk.f32.mxu1 %vm127_vm1, %v116_v13 }
  0xd2   :  { %261 = vmatmul.mubr.msk.f32.vlgmr.msra.gmra.mxu1 %vm127_vm1, %v117_v14 }
 0x192   :  { %v262_v16 = vpop.f32.mrf.mxu1 }
 0x193   :  { %v206_v17 = vadd.f32 %v262_v16, %v232_v15 }
 0x194   :  { %v200_v18 = vpop.f32.mrf.mxu1 }
 0x195   :  { %v210_v19 = vadd.f32 %v206_v17, %v22_v5  ;;  %v201_v20 = vadd.f32 %v232_v15, %v200_v18 }
 0x197   :  { %212 = vst.msk [vmem:[#allocation2 + $0x8] sm:$0xff] %vm34_vm0, %v210_v19  ;;  %v209_v21 = vadd.f32 %v201_v20, %v21_v2 }
 0x199   :  { %211 = vst.msk [vmem:[#allocation2] sm:$0xff] %vm34_vm0, %v209_v21 }
 0x19a   :  { %277 = shalt.err (!%p274_p4)
}
 0x19b   :  { %s289_s4 = smov 128   ;;  %s290_s12 = smov 8  }
 0x19c   :  { %224 = dma.vmem_to_hbm [thread:$0]  %s219_s11, 256, %s363_s5, [#allocation3], %s289_s4, %s289_s4, %s290_s12  }
 0x19d   :  { %286 = dma.done.wait [#allocation3], 256  }
 0x19e   :  { %287 = vsyncadd [#allocation3], 4294967040 }
 0x19f   :  { %228 = vsyncpa [#allocation3], 1 }

</bundles_post_ra>
